<compile_context>
chip_gen: v5e
topology: v5e:2x2
jax: 0.10.0
libtpu: 0.0.40
codegen_flags: <defaults>
</compile_context>

<pallas_src>
import jax
import jax.numpy as jnp
from jax.experimental import pallas as pl
from jax.experimental.pallas import tpu as pltpu

PI = 3.14159265358979323846


def _round_up(a, b):
    return ((a + b - 1) // b) * b


def _make_phong_kernel(tm, ch):
    """Build a kernel for a (6, tm, 128) input block, processed in ch-row chunks."""
    n_chunks = tm // ch

    def kernel(params_ref, x_ref, o_ref):
        # params_ref: (8,) SMEM f32 = [d0, d1, d2, s0, s1, s2, q, 0]
        # x_ref: (6, tm, 128) VMEM f32 ; o_ref: (3, tm, 128) VMEM f32
        d0, d1, d2 = params_ref[0], params_ref[1], params_ref[2]
        s0, s1, s2 = params_ref[3], params_ref[4], params_ref[5]
        q = params_ref[6]

        def do_chunk(row0):
            rows = pl.ds(row0, ch)
            hx = x_ref[0, rows, :]
            hy = x_ref[1, rows, :]
            hz = x_ref[2, rows, :]
            dx = x_ref[3, rows, :]
            dy = x_ref[4, rows, :]
            dz = x_ref[5, rows, :]

            # cosine = r.wo with wi = Rz(phi_h)Ry(theta_h) d, wo = 2(wi.h)h - wi,
            # r = wi*(-1,-1,1).  Closed form via rotation identities (see header).
            st2 = hx * hx + hy * hy
            r2 = st2 + hz * hz                      # |h|^2
            dd = dx * dx + dy * dy + dz * dz        # |d|^2 = |wi|^2
            st = jnp.sqrt(st2)                      # sqrt(hx^2 + hy^2)
            u = dz * hz - dx * st                   # wiz * |h|

            r_pos = r2 > 0.0
            inv_r2 = 1.0 / jnp.where(r_pos, r2, 1.0)
            cos_full = (dd
                        - 2.0 * (u * u) * inv_r2
                        - 2.0 * (dz * dz) * r2
                        + 4.0 * (dz * hz) * u)
            cos_degen = dd - 2.0 * (dz * dz)        # h == 0: wi = d, wo = -d
            cosine = jnp.where(r_pos, cos_full, cos_degen)

            cosine = jnp.maximum(cosine, 0.0) + 1e-5
            cq = jnp.exp(q * jnp.log(cosine))       # cosine ** q

            # out_c = diffuse_c + cosine**q * (ks_c * (2 + q) / (2 * PI))
            o_ref[0, rows, :] = d0 + cq * s0
            o_ref[1, rows, :] = d1 + cq * s1
            o_ref[2, rows, :] = d2 + cq * s2

        if n_chunks <= 8:
            # Fully unrolled short chain: gives the scheduler visibility to
            # overlap EUP FIFO latency of one chunk with VPU work of the next.
            for ci in range(n_chunks):
                do_chunk(ci * ch)
        else:
            @pl.loop(0, n_chunks)
            def _(ci):
                do_chunk(pl.multiple_of(ci * ch, ch))

    return kernel


def phong_params(factor_sum, factor_ratio, factor_q):
    """Fold module parameters into the packed (8,) f32 SMEM kernel operand."""
    s = jax.nn.sigmoid(factor_sum)
    ratio = jax.nn.sigmoid(factor_ratio)
    q = jnp.exp(factor_q)[0]
    kd = s * ratio
    ks = s * (1.0 - ratio)
    diffuse = kd / PI                               # (3,)
    spec_coef = ks * (2.0 + q) / (2.0 * PI)         # (3,)
    return jnp.concatenate(
        [diffuse, spec_coef, jnp.reshape(q, (1,)), jnp.zeros((1,), jnp.float32)]
    ).astype(jnp.float32)                           # (8,)


def phong_forward_cm(x_cm, params, *, tm_max=1024):
    """Channel-major core: x_cm (6, M, 128) f32 -> (3, M, 128) f32.

    Performance-critical entry point (no layout plumbing, no padding copies).
    """
    assert x_cm.shape[0] == 6 and x_cm.shape[2] == 128
    M = x_cm.shape[1]

    # Block rows: keep >= 2 grid steps whenever M > 8 so ("parallel",) can
    # shard both v7x TensorCores; cap at tm_max (9 MiB double-buffered @1024).
    if M <= 8:
        tm = M                                      # single full-dim block
    else:
        tm = min(tm_max, _round_up(pl.cdiv(M, 2), 8))

    # Inner chunk size: bound vreg live ranges inside large blocks.
    if tm <= 128:
        ch = tm
    elif tm % 128 == 0:
        ch = 128
    elif tm % 64 == 0:
        ch = 64
    elif tm % 32 == 0:
        ch = 32
    elif tm % 16 == 0:
        ch = 16
    else:
        ch = 8                                      # tm is a multiple of 8 here

    # No padding / slicing: ragged last block is handled by Pallas (elementwise
    # kernel => tail reads are don't-care, tail writes dropped on writeback).
    return pl.pallas_call(
        _make_phong_kernel(tm, ch),
        out_shape=jax.ShapeDtypeStruct((3, M, 128), jnp.float32),
        grid_spec=pl.GridSpec(
            grid=(pl.cdiv(M, tm),),
            in_specs=[
                pl.BlockSpec(memory_space=pltpu.MemorySpace.SMEM),   # params (8,)
                pl.BlockSpec((6, tm, 128), lambda i: (0, i, 0)),     # x block
            ],
            out_specs=pl.BlockSpec((3, tm, 128), lambda i: (0, i, 0)),
        ),
        compiler_params=pltpu.CompilerParams(
            dimension_semantics=("parallel",)),                      # megacore on v7x
    )(params, x_cm)


def phong_forward(x, factor_sum, factor_ratio, factor_q, *, tm_max=1024):
    """x: (N, 6) f32  ->  (N, 3) f32  (matches phong.forward)."""
    N = x.shape[0]
    params = phong_params(factor_sum, factor_ratio, factor_q)

    # Layout plumbing required by the (N,6)->(N,3) contract (one transpose pass
    # each way).  Performance-critical callers should produce/consume the
    # channel-major (6, M, 128)/(3, M, 128) layout and call phong_forward_cm
    # directly (or fuse this transpose into the producer of x).
    M = pl.cdiv(N, 128)
    Np = M * 128
    xf = x.astype(jnp.float32)
    if Np != N:
        xf = jnp.pad(xf, ((0, Np - N), (0, 0)))
    x_cm = jnp.transpose(xf.reshape(M, 128, 6), (2, 0, 1))      # (6, M, 128)

    out_cm = phong_forward_cm(x_cm, params, tm_max=tm_max)

    out = jnp.transpose(out_cm, (1, 2, 0)).reshape(Np, 3)
    return out[:N]


def _phong_reference(x, factor_sum, factor_ratio, factor_q):
    """Pure-JAX reference mirroring the PyTorch module (for validation)."""
    s = jax.nn.sigmoid(factor_sum)
    ratio = jax.nn.sigmoid(factor_ratio)
    q = jnp.exp(factor_q)[0]
    kd = s * ratio
    ks = s * (1.0 - ratio)
    diffuse = kd / PI

    h, d = x[:, :3], x[:, 3:]
    st = jnp.sqrt(h[:, 0] ** 2 + h[:, 1] ** 2)
    theta_h = jnp.arctan2(st, h[:, 2])
    phi_h = jnp.arctan2(h[:, 1], h[:, 0])
    ct, stn = jnp.cos(theta_h), jnp.sin(theta_h)
    cp, sp = jnp.cos(phi_h), jnp.sin(phi_h)
    tx = d[:, 0] * ct + d[:, 2] * stn
    ty = d[:, 1]
    tz = -d[:, 0] * stn + d[:, 2] * ct
    wi = jnp.stack([tx * cp - ty * sp, ty * cp + tx * sp, tz], axis=1)
    wo = 2.0 * jnp.sum(wi * h, axis=1, keepdims=True) * h - wi
    r = wi * jnp.array([-1.0, -1.0, 1.0], jnp.float32)
    cosine = jnp.maximum(jnp.sum(r * wo, axis=1), 0.0) + 1e-5
    specular = jnp.outer(cosine ** q, ks * (2.0 + q) / (2.0 * PI))
    return diffuse[None, :] + specular


def _make_inputs(key, n, *, unit=True):
    k1, k2, k3, k4 = jax.random.split(key, 4)
    h = jax.random.normal(k1, (n, 3), jnp.float32)
    d = jax.random.normal(k2, (n, 3), jnp.float32)
    if unit:
        h = h / jnp.linalg.norm(h, axis=1, keepdims=True)
        d = d / jnp.linalg.norm(d, axis=1, keepdims=True)
    else:
        # Non-unit half/diff vectors: validates the closed-form cosine identity
        # (exact for any nonzero h) against the rotation-based reference.
        h = h * jax.random.uniform(k3, (n, 1), jnp.float32, 0.5, 2.0)
        d = d * jax.random.uniform(k4, (n, 1), jnp.float32, 0.5, 2.0)
    return jnp.concatenate([h, d], axis=1)   # (n, 6)


if __name__ == "__main__":
    key = jax.random.PRNGKey(0)
    k1, k2, k3, k4, k5 = jax.random.split(key, 5)

    # deterministic "randn"-style parameter init (matches __init__ shapes)
    factor_sum = jax.random.normal(k1, (3,), jnp.float32)
    factor_ratio = jax.random.normal(k2, (3,), jnp.float32)
    factor_q = jax.random.normal(k3, (1,), jnp.float32)

    # test 1: small batch, unit h/d (single full-dim block, 1 grid step)
    N1 = 256
    x1 = _make_inputs(k4, N1, unit=True)
    out1 = jax.block_until_ready(phong_forward(x1, factor_sum, factor_ratio, factor_q))
    assert out1.shape == (N1, 3) and out1.dtype == jnp.float32
    ref1 = _phong_reference(x1, factor_sum, factor_ratio, factor_q)
    assert jnp.allclose(out1, ref1, rtol=1e-3, atol=1e-3), "mismatch (test 1)"

    # test 2: multi-step grid with a ragged last block + non-unit h/d
    N2 = 2500
    x2 = _make_inputs(k5, N2, unit=False)
    out2 = jax.block_until_ready(phong_forward(x2, factor_sum, factor_ratio, factor_q))
    assert out2.shape == (N2, 3) and out2.dtype == jnp.float32
    ref2 = _phong_reference(x2, factor_sum, factor_ratio, factor_q)
    # slightly looser atol: non-unit inputs scale the fp32 rounding error of the
    # cosine near the ReLU/1e-5 clamp boundary
    assert jnp.allclose(out2, ref2, rtol=1e-3, atol=2e-3), "mismatch (test 2)"

    print("KERNEL_OK")
</pallas_src>

<mosaic_0001>
module attributes {stable_mosaic.version = 11 : i64} {
  func.func @kernel(%arg0: i32, %arg1: memref<8xf32, #tpu.memory_space<smem>>, %arg2: memref<6x2x128xf32, #tpu.memory_space<vmem>>, %arg3: memref<3x2x128xf32, #tpu.memory_space<vmem>>) attributes {dimension_semantics = [#tpu.dimension_semantics<parallel>], iteration_bounds = array<i64: 1>, scalar_prefetch = 0 : i64, scratch_operands = 0 : i64, tpu.core_type = #tpu.core_type<tc>, window_params = [{transform_indices = @transform_0, window_bounds = array<i64: 8>}, {transform_indices = @transform_1, window_bounds = array<i64: 6, 2, 128>}, {transform_indices = @transform_2, window_bounds = array<i64: 3, 2, 128>}]} {
    %c0 = arith.constant 0 : index
    %0 = memref.load %arg1[%c0] : memref<8xf32, #tpu.memory_space<smem>>
    %c1 = arith.constant 1 : index
    %1 = memref.load %arg1[%c1] : memref<8xf32, #tpu.memory_space<smem>>
    %c2 = arith.constant 2 : index
    %2 = memref.load %arg1[%c2] : memref<8xf32, #tpu.memory_space<smem>>
    %c3 = arith.constant 3 : index
    %3 = memref.load %arg1[%c3] : memref<8xf32, #tpu.memory_space<smem>>
    %c4 = arith.constant 4 : index
    %4 = memref.load %arg1[%c4] : memref<8xf32, #tpu.memory_space<smem>>
    %c5 = arith.constant 5 : index
    %5 = memref.load %arg1[%c5] : memref<8xf32, #tpu.memory_space<smem>>
    %c6 = arith.constant 6 : index
    %6 = memref.load %arg1[%c6] : memref<8xf32, #tpu.memory_space<smem>>
    %c0_0 = arith.constant 0 : index
    %c0_1 = arith.constant 0 : index
    %c0_2 = arith.constant 0 : index
    %7 = vector.load %arg2[%c0_0, %c0_1, %c0_2] : memref<6x2x128xf32, #tpu.memory_space<vmem>>, vector<1x2x128xf32>
    %8 = vector.shape_cast %7 : vector<1x2x128xf32> to vector<2x128xf32>
    %c1_3 = arith.constant 1 : index
    %c0_4 = arith.constant 0 : index
    %c0_5 = arith.constant 0 : index
    %9 = vector.load %arg2[%c1_3, %c0_4, %c0_5] : memref<6x2x128xf32, #tpu.memory_space<vmem>>, vector<1x2x128xf32>
    %10 = vector.shape_cast %9 : vector<1x2x128xf32> to vector<2x128xf32>
    %c2_6 = arith.constant 2 : index
    %c0_7 = arith.constant 0 : index
    %c0_8 = arith.constant 0 : index
    %11 = vector.load %arg2[%c2_6, %c0_7, %c0_8] : memref<6x2x128xf32, #tpu.memory_space<vmem>>, vector<1x2x128xf32>
    %12 = vector.shape_cast %11 : vector<1x2x128xf32> to vector<2x128xf32>
    %c3_9 = arith.constant 3 : index
    %c0_10 = arith.constant 0 : index
    %c0_11 = arith.constant 0 : index
    %13 = vector.load %arg2[%c3_9, %c0_10, %c0_11] : memref<6x2x128xf32, #tpu.memory_space<vmem>>, vector<1x2x128xf32>
    %14 = vector.shape_cast %13 : vector<1x2x128xf32> to vector<2x128xf32>
    %c4_12 = arith.constant 4 : index
    %c0_13 = arith.constant 0 : index
    %c0_14 = arith.constant 0 : index
    %15 = vector.load %arg2[%c4_12, %c0_13, %c0_14] : memref<6x2x128xf32, #tpu.memory_space<vmem>>, vector<1x2x128xf32>
    %16 = vector.shape_cast %15 : vector<1x2x128xf32> to vector<2x128xf32>
    %c5_15 = arith.constant 5 : index
    %c0_16 = arith.constant 0 : index
    %c0_17 = arith.constant 0 : index
    %17 = vector.load %arg2[%c5_15, %c0_16, %c0_17] : memref<6x2x128xf32, #tpu.memory_space<vmem>>, vector<1x2x128xf32>
    %18 = vector.shape_cast %17 : vector<1x2x128xf32> to vector<2x128xf32>
    %19 = arith.mulf %8, %8 : vector<2x128xf32>
    %20 = arith.mulf %10, %10 : vector<2x128xf32>
    %21 = arith.addf %19, %20 : vector<2x128xf32>
    %22 = arith.mulf %12, %12 : vector<2x128xf32>
    %23 = arith.addf %21, %22 : vector<2x128xf32>
    %24 = arith.mulf %14, %14 : vector<2x128xf32>
    %25 = arith.mulf %16, %16 : vector<2x128xf32>
    %26 = arith.addf %24, %25 : vector<2x128xf32>
    %27 = arith.mulf %18, %18 : vector<2x128xf32>
    %28 = arith.addf %26, %27 : vector<2x128xf32>
    %29 = math.sqrt %21 : vector<2x128xf32>
    %30 = arith.mulf %18, %12 : vector<2x128xf32>
    %31 = arith.mulf %14, %29 : vector<2x128xf32>
    %32 = arith.subf %30, %31 : vector<2x128xf32>
    %cst = arith.constant 0.000000e+00 : f32
    %33 = vector.broadcast %cst : f32 to vector<2x128xf32>
    %34 = arith.cmpf ogt, %23, %33 : vector<2x128xf32>
    %cst_18 = arith.constant 1.000000e+00 : f32
    %35 = vector.broadcast %cst_18 : f32 to vector<2x128xf32>
    %36 = arith.select %34, %23, %35 : vector<2x128xi1>, vector<2x128xf32>
    %cst_19 = arith.constant 1.000000e+00 : f32
    %37 = vector.broadcast %cst_19 : f32 to vector<2x128xf32>
    %38 = arith.divf %37, %36 : vector<2x128xf32>
    %39 = arith.mulf %32, %32 : vector<2x128xf32>
    %cst_20 = arith.constant 2.000000e+00 : f32
    %40 = vector.broadcast %cst_20 : f32 to vector<2x128xf32>
    %41 = arith.mulf %40, %39 : vector<2x128xf32>
    %42 = arith.mulf %41, %38 : vector<2x128xf32>
    %43 = arith.subf %28, %42 : vector<2x128xf32>
    %44 = arith.mulf %18, %18 : vector<2x128xf32>
    %cst_21 = arith.constant 2.000000e+00 : f32
    %45 = vector.broadcast %cst_21 : f32 to vector<2x128xf32>
    %46 = arith.mulf %45, %44 : vector<2x128xf32>
    %47 = arith.mulf %46, %23 : vector<2x128xf32>
    %48 = arith.subf %43, %47 : vector<2x128xf32>
    %49 = arith.mulf %18, %12 : vector<2x128xf32>
    %cst_22 = arith.constant 4.000000e+00 : f32
    %50 = vector.broadcast %cst_22 : f32 to vector<2x128xf32>
    %51 = arith.mulf %50, %49 : vector<2x128xf32>
    %52 = arith.mulf %51, %32 : vector<2x128xf32>
    %53 = arith.addf %48, %52 : vector<2x128xf32>
    %54 = arith.mulf %18, %18 : vector<2x128xf32>
    %cst_23 = arith.constant 2.000000e+00 : f32
    %55 = vector.broadcast %cst_23 : f32 to vector<2x128xf32>
    %56 = arith.mulf %55, %54 : vector<2x128xf32>
    %57 = arith.subf %28, %56 : vector<2x128xf32>
    %58 = arith.select %34, %53, %57 : vector<2x128xi1>, vector<2x128xf32>
    %cst_24 = arith.constant 0.000000e+00 : f32
    %59 = vector.broadcast %cst_24 : f32 to vector<2x128xf32>
    %60 = arith.maximumf %58, %59 : vector<2x128xf32>
    %cst_25 = arith.constant 9.99999974E-6 : f32
    %61 = vector.broadcast %cst_25 : f32 to vector<2x128xf32>
    %62 = arith.addf %60, %61 : vector<2x128xf32>
    %63 = math.log %62 : vector<2x128xf32>
    %64 = vector.broadcast %6 : f32 to vector<2x128xf32>
    %65 = arith.mulf %64, %63 : vector<2x128xf32>
    %66 = math.exp %65 : vector<2x128xf32>
    %67 = vector.broadcast %3 : f32 to vector<2x128xf32>
    %68 = arith.mulf %66, %67 : vector<2x128xf32>
    %69 = vector.broadcast %0 : f32 to vector<2x128xf32>
    %70 = arith.addf %69, %68 : vector<2x128xf32>
    %c0_26 = arith.constant 0 : index
    %c0_27 = arith.constant 0 : index
    %c0_28 = arith.constant 0 : index
    %71 = vector.load %arg3[%c0_26, %c0_27, %c0_28] : memref<3x2x128xf32, #tpu.memory_space<vmem>>, vector<1x2x128xf32>
    %72 = vector.shape_cast %71 : vector<1x2x128xf32> to vector<2x128xf32>
    %73 = vector.shape_cast %70 : vector<2x128xf32> to vector<1x2x128xf32>
    tpu.vector_store %arg3[%c0_26, %c0_27, %c0_28], %73 {strides = array<i32>} : memref<3x2x128xf32, #tpu.memory_space<vmem>>, vector<1x2x128xf32>,
    %74 = vector.broadcast %4 : f32 to vector<2x128xf32>
    %75 = arith.mulf %66, %74 : vector<2x128xf32>
    %76 = vector.broadcast %1 : f32 to vector<2x128xf32>
    %77 = arith.addf %76, %75 : vector<2x128xf32>
    %c1_29 = arith.constant 1 : index
    %c0_30 = arith.constant 0 : index
    %c0_31 = arith.constant 0 : index
    %78 = vector.load %arg3[%c1_29, %c0_30, %c0_31] : memref<3x2x128xf32, #tpu.memory_space<vmem>>, vector<1x2x128xf32>
    %79 = vector.shape_cast %78 : vector<1x2x128xf32> to vector<2x128xf32>
    %80 = vector.shape_cast %77 : vector<2x128xf32> to vector<1x2x128xf32>
    tpu.vector_store %arg3[%c1_29, %c0_30, %c0_31], %80 {strides = array<i32>} : memref<3x2x128xf32, #tpu.memory_space<vmem>>, vector<1x2x128xf32>,
    %81 = vector.broadcast %5 : f32 to vector<2x128xf32>
    %82 = arith.mulf %66, %81 : vector<2x128xf32>
    %83 = vector.broadcast %2 : f32 to vector<2x128xf32>
    %84 = arith.addf %83, %82 : vector<2x128xf32>
    %c2_32 = arith.constant 2 : index
    %c0_33 = arith.constant 0 : index
    %c0_34 = arith.constant 0 : index
    %85 = vector.load %arg3[%c2_32, %c0_33, %c0_34] : memref<3x2x128xf32, #tpu.memory_space<vmem>>, vector<1x2x128xf32>
    %86 = vector.shape_cast %85 : vector<1x2x128xf32> to vector<2x128xf32>
    %87 = vector.shape_cast %84 : vector<2x128xf32> to vector<1x2x128xf32>
    tpu.vector_store %arg3[%c2_32, %c0_33, %c0_34], %87 {strides = array<i32>} : memref<3x2x128xf32, #tpu.memory_space<vmem>>, vector<1x2x128xf32>,
    return
  }
  func.func @transform_0(%arg0: i32) -> i32 {
    %c0_i32 = arith.constant 0 : i32
    %c0_i32_0 = arith.constant 0 : i32
    return %c0_i32 : i32
  }
  func.func @transform_1(%arg0: i32) -> (i32, i32, i32) {
    %c0_i32 = arith.constant 0 : i32
    %c0_i32_0 = arith.constant 0 : i32
    %c0_i32_1 = arith.constant 0 : i32
    return %c0_i32, %arg0, %c0_i32_0 : i32, i32, i32
  }
  func.func @transform_2(%arg0: i32) -> (i32, i32, i32) {
    %c0_i32 = arith.constant 0 : i32
    %c0_i32_0 = arith.constant 0 : i32
    %c0_i32_1 = arith.constant 0 : i32
    return %c0_i32, %arg0, %c0_i32_0 : i32, i32, i32
  }
}

</mosaic_0001>

<bundles_post_ra>
// kernel: tpu_custom_call.1
= control target key start
LH: loop header
LB: loop body
LE: loop exit
PB: predicated region body
PF: predicated region fallthrough
CT: control target
= control target key end

     0   :  { %7 = vsyncpa [#allocation5], 0  ;;  %s280_s0 = inlined_call_operand.hbm [shape: f32[8], index: 0, kind: input, shape index: {}]   ;;  %s281_s1 = inlined_call_operand.hbm [shape: f32[6,2,128], index: 1, kind: input, shape index: {}]   ;;  %s282_s2 = inlined_call_operand.hbm [shape: f32[3,2,128], index: 2, kind: output, shape index: {}]  }
   0x1   :  { %8 = vsyncpa [#allocation3], 0 }
   0x2   :  { %9 = vsyncpa [#allocation4], 0  ;;  %s15_s11 = sshll.u32 %s280_s0, 4  ;;  %s23_s14 = sshll.u32 %s281_s1, 4  ;;  %s16_s11 = int_to_ptr.hbm [resolvable:$true] %s15_s11  ;;  %s24_s14 = int_to_ptr.hbm [resolvable:$true] %s23_s14 }
   0x3   :  { %s243_s15 = smov [#allocation2]   ;;  %s244_s16 = smov [#allocation6]  }
   0x4   :  { %18 = dma.hbm_to_smem %s16_s11, 16, %s243_s15, [#allocation5]  }
   0x5   :  { %s25_s17 = sshll.u32 %s244_s16, 4  ;;  %s245_s18 = smov 32   ;;  %s26_s17 = int_to_ptr.vmem [resolvable:$true] %s25_s17 }
   0x6   :  { %s246_s19 = smov 2  }
   0x7   :  { %31 = dma.hbm_to_vmem [thread:$0]  %s24_s14, 192, %s26_s17, [#allocation3], %s245_s18, %s245_s18, %s246_s19  }
   0x8   :  { %237 = dma.done.wait [#allocation5], 16  }
   0x9   :  { %238 = vsyncadd [#allocation5], 4294967280 }
   0xa   :  { %239 = dma.done.wait [#allocation3], 192  }
   0xb   :  { %240 = vsyncadd [#allocation3], 4294967104 }
   0xc   :  { %40 = sfence }
   0xd   :  { %v48_v0 = vld [vmem:[#allocation6] sm:$0x3]  ;;  %v50_v1 = vld [vmem:[#allocation6 + $0x2] sm:$0x3]  ;;  %v52_v2 = vld [vmem:[#allocation6 + $0x4] sm:$0x3] }
   0xe   :  { %v59_v3 = vmul.f32 %v48_v0, %v48_v0  ;;  %v60_v4 = vmul.f32 %v50_v1, %v50_v1  ;;  %v62_v5 = vmul.f32 %v52_v2, %v52_v2  ;;  %v56_v17 = vld [vmem:[#allocation6 + $0x8] sm:$0x3]  ;;  %v58_v20 = vld [vmem:[#allocation6 + $0xa] sm:$0x3]  ;;  %v54_v22 = vld [vmem:[#allocation6 + $0x6] sm:$0x3] }
   0xf   :  { %v64_v24 = vmul.f32 %v54_v22, %v54_v22  ;;  %v65_v25 = vmul.f32 %v56_v17, %v56_v17  ;;  %v81_v28 = vmul.f32 %v58_v20, %v52_v2  ;;  %v67_v32 = vmul.f32 %v58_v20, %v58_v20  ;;  %s163_s0 = sld [smem:[#allocation2 + $0x6]]  ;;  %s247_s25 = smov [#allocation7]  }
  0x10   :  { %v61_v6 = vadd.f32 %v60_v4, %v59_v3  ;;  %s41_s1 = sld [smem:[#allocation2]]  ;;  %s142_s26 = sshll.u32 %s247_s25, 4  ;;  %s143_s26 = int_to_ptr.vmem [resolvable:$true] %s142_s26 }
  0x11   :  { %v66_v35 = vadd.f32 %v65_v25, %v64_v24  ;;  %v105_v39 = vmul.f32 2.0, %v67_v32  ;;  %v108_v43 = vmul.f32 4.0, %v81_v28  ;;  %s160_s20 = sld [smem:[#allocation2 + $0x3]]  ;;  %s144_s29 = sshll.u32 %s282_s2, 4  ;;  %s145_s29 = int_to_ptr.hbm [resolvable:$true] %s144_s29 }
  0x12   :  { %v63_v7 = vadd.f32 %v62_v5, %v61_v6  ;;  %169 = vrsqrt.f32 %v61_v6  ;;  %vm76_vm1 = vcmp.eq.f32.partialorder %v61_v6, inf  ;;  %v79_v21 = vand.u32 2147483648, %v61_v6  ;;  %s161_s21 = sld [smem:[#allocation2 + $0x4]] }
  0x13   :  { %vm78_vm2 = vcmp.eq.f32.partialorder %v61_v6, 0.0  ;;  %v68_v41 = vadd.f32 %v67_v32, %v66_v35  ;;  %s162_s22 = sld [smem:[#allocation2 + $0x5]] }
  0x14   :  { %vm84_vm0 = vcmp.gt.f32.partialorder %v63_v7, 0.0  ;;  %v106_v45 = vmul.f32 %v105_v39, %v63_v7  ;;  %s158_s23 = sld [smem:[#allocation2 + $0x1]] }
  0x15   :  { %v85_v8 = vsel %vm84_vm0, %v63_v7, 1.0  ;;  %v111_v49 = vsub.f32 %v68_v41, %v105_v39  ;;  %v117_v55 = vstv %s163_s0  ;;  %s159_s24 = sld [smem:[#allocation2 + $0x2]] }
  0x16   :  { %171 = vrcp.f32 %v85_v8  ;;  %vm91_vm3 = vweird.f32 %v85_v8  ;;  %v97_v26 = vand.u32 2147483648, %v85_v8  ;;  %v95_v30 = vand.u32 2147483647, %v85_v8 }
  0x17   :  { %v121_v59 = vstv %s160_s20  ;;  %v123_v63 = vstv %s41_s1 }
  0x18   :  { %v170_v9 = vpop.eup %169  ;;  %v98_v34 = vor.u32 1.1754944e-38, %v97_v26  ;;  %vm96_vm6 = vcmp.eq.f32.partialorder %v95_v30, 8.507059e+37  ;;  %v126_v60 = vstv %s161_s21 }
  0x19   :  { %v70_v10 = vmul.f32 %v170_v9, %v61_v6  ;;  %v132_v61 = vstv %s162_s22 }
  0x1a   :  { %v128_v0 = vstv %s158_s23 }
  0x1b   :  { %v71_v11 = vmul.f32 %v170_v9, %v70_v10  ;;  %v134_v1 = vstv %s159_s24 }
  0x1c   :  { %v172_v12 = vpop.eup %171 }
  0x1d   :  { %v72_v13 = vmul.f32 0.5, %v71_v11  ;;  %v87_v14 = vmul.f32 %v172_v12, %v85_v8  ;;  %vm92_vm4 = vweird.f32 %v172_v12 }
  0x1e   :  { %vm93_vm5 = vmor %vm91_vm3, %vm92_vm4 }
  0x1f   :  { %v73_v15 = vsub.f32 1.5, %v72_v13  ;;  %v88_v16 = vsub.f32 1.0, %v87_v14 }
  0x21   :  { %v74_v18 = vmul.f32 %v170_v9, %v73_v15  ;;  %v89_v19 = vmul.f32 %v172_v12, %v88_v16 }
  0x23   :  { %v75_v23 = vmul.f32 %v74_v18, %v61_v6  ;;  %v90_v29 = vadd.f32 %v172_v12, %v89_v19 }
  0x25   :  { %v77_v27 = vsel %vm76_vm1, %v61_v6, %v75_v23  ;;  %v94_v37 = vsel %vm93_vm5, %v172_v12, %v90_v29 }
  0x26   :  { %v80_v31 = vsel %vm78_vm2, %v79_v21, %v77_v27  ;;  %v99_v40 = vsel %vm96_vm6, %v98_v34, %v94_v37 }
  0x27   :  { %v82_v33 = vmul.f32 %v80_v31, %v54_v22 }
  0x29   :  { %v83_v36 = vsub.f32 %v81_v28, %v82_v33 }
  0x2b   :  { %v101_v38 = vmul.f32 %v83_v36, %v83_v36  ;;  %v109_v47 = vmul.f32 %v108_v43, %v83_v36 }
  0x2d   :  { %v102_v42 = vmul.f32 2.0, %v101_v38 }
  0x2f   :  { %v103_v44 = vmul.f32 %v102_v42, %v99_v40 }
  0x31   :  { %v104_v46 = vsub.f32 %v68_v41, %v103_v44 }
  0x33   :  { %v107_v48 = vsub.f32 %v104_v46, %v106_v45 }
  0x35   :  { %v110_v50 = vadd.f32 %v109_v47, %v107_v48 }
  0x37   :  { %v112_v51 = vsel %vm84_vm0, %v110_v50, %v111_v49 }
  0x38   :  { %v113_v52 = vmax.f32 %v112_v51, 0.0 }
  0x3a   :  { %v114_v53 = vadd.f32 1e-05, %v113_v52 }
  0x3c   :  { %173 = vlog2.f32 %v114_v53 }
  0x42   :  { %v174_v54 = vpop.eup %173 }
  0x43   :  { %v116_v56 = vmul.f32 0.6931472, %v174_v54 }
  0x45   :  { %v118_v57 = vmul.f32 %v117_v55, %v116_v56 }
  0x47   :  { %v119_v58 = vmul.f32 1.442695, %v118_v57 }
  0x49   :  { %175 = vpow2.f32 %v119_v58 }
  0x4f   :  { %v176_v62 = vpop.eup %175 }
  0x50   :  { %v122_v2 = vmul.f32 %v176_v62, %v121_v59  ;;  %v127_v3 = vmul.f32 %v176_v62, %v126_v60  ;;  %v133_v4 = vmul.f32 %v176_v62, %v132_v61 }
  0x52   :  { %v124_v5 = vadd.f32 %v123_v63, %v122_v2  ;;  %v129_v6 = vadd.f32 %v128_v0, %v127_v3  ;;  %v135_v7 = vadd.f32 %v134_v1, %v133_v4 }
  0x54   :  { %125 = vst [vmem:[#allocation7] sm:$0x3] %v124_v5 }
  0x55   :  { %131 = vst [vmem:[#allocation7 + $0x2] sm:$0x3] %v129_v6 }
  0x56   :  { %137 = vst [vmem:[#allocation7 + $0x4] sm:$0x3] %v135_v7 }
  0x57   :  { %150 = dma.vmem_to_hbm [thread:$0]  %s143_s26, 96, %s145_s29, [#allocation4], %s245_s18, %s245_s18, %s246_s19  }
  0x58   :  { %241 = dma.done.wait [#allocation4], 96  }
  0x59   :  { %242 = vsyncadd [#allocation4], 4294967200 }
  0x5a   :  { %155 = vsyncpa [#allocation3], 1 }
  0x5b   :  { %156 = vsyncpa [#allocation4], 1 }
  0x5c   :  { %157 = vsyncpa [#allocation5], 1 }

</bundles_post_ra>
